<compile_context>
chip_gen: v7x
topology: tpu7x:2x2x1
jax: 0.10.0
libtpu: 0.0.40
codegen_flags: <defaults>
</compile_context>

<pallas_src>
import functools

import jax
import jax.numpy as jnp
from jax.experimental import pallas as pl
from jax.experimental.pallas import tpu as pltpu


def _transition_block3_kernel(x_ref, scale_ref, shift_ref, wt_ref, o_ref):
    # x_ref:     (nb, Cin, ts)   channel-major activation tiles (spatial on lanes)
    # scale_ref: (Cin, 1)        per-channel fused BN scale (gamma / sqrt(var + eps))
    # shift_ref: (Cin, 1)        per-channel fused BN shift (beta - mean * scale)
    # wt_ref:    (Cout, Cin)     transposed 1x1 conv-transpose weight
    # o_ref:     (nb, Cout, ts)  lane-dense output tiles
    scale = scale_ref[...]
    shift = shift_ref[...]
    wt = wt_ref[...]
    nb = x_ref.shape[0]
    for b in range(nb):  # static, small -> unrolled per-batch 2D MXU matmuls
        # BN + ReLU fused: one multiply-add + one max per element (VPU), done in the
        # input/matmul dtype (bf16 stays bf16 on v6e/v7x; f32 stays f32).
        # TODO(synk): on v5e (no bf16 VALU) an f32 BN+ReLU would be marginally better.
        h = jnp.maximum(x_ref[b] * scale + shift, 0.0)
        # 1x1 ConvTranspose == channel matmul (MXU), f32 accumulation.
        o_ref[b] = jnp.dot(
            wt, h, preferred_element_type=jnp.float32
        ).astype(o_ref.dtype)


def _cdiv(a, b):
    return -(-a // b)


def _choose_tiling(n, s, cin, cout, max_cols_cap):
    # VMEM bytes per (batch, spatial) column: double-buffered input + output tiles
    # plus in-kernel f32 intermediates (h, matmul accumulator, cast copies), counted
    # at 4 B/elem unconditionally (conservative for bf16 inputs).
    per_col = 4 * (2 * cin + 2 * cout + 2 * cin + cout)
    budget = 6 * 1024 * 1024  # safe under v5e's 16 MiB default scoped VMEM limit
    max_cols = max(128, min(budget // per_col, max_cols_cap))

    # Spatial tile: whole extent if it fits, else a lane-aligned multiple of 128.
    # The partial last block is masked by Pallas; contraction is over channels, so
    # garbage columns never reach valid outputs.
    ts = s if s <= max_cols else max(128, (max_cols // 128) * 128)

    # Batch fold: pack nb images per grid step so tiny spatial extents still give
    # large DMAs and few grid steps (~0.35 us overhead per step).
    nb = max(1, min(n, max_cols // ts))

    # v7x megacore: keep >= 2 grid steps when the problem size allows it, so both
    # TensorCores get work (free on v5e/v6e, which have a single TC).
    if _cdiv(n, nb) * _cdiv(s, ts) < 2:
        if nb > 1:
            nb = max(1, nb // 2)
        elif s > 128:
            ts = max(128, _cdiv(_cdiv(s, 2), 128) * 128)
    return nb, ts


@functools.partial(jax.jit, static_argnames=("max_cols_cap",))
def transition_block3(x_nchw, gamma, beta, running_mean, running_var, weight, *,
                      max_cols_cap=4096):
    """x_nchw: (N, Cin, H, W); weight: (Cin, Cout, 1, 1). Returns (N, Cout, H, W)."""
    eps = 1e-5
    n, cin, h, w = x_nchw.shape
    cout = weight.shape[1]
    s = h * w

    in_dtype = x_nchw.dtype
    # Matmul/BN dtype: keep bf16 inputs in bf16 (halves DMA/VMEM bytes, native bf16
    # VALU+MXU on v6e/v7x); otherwise f32.  Accumulation is always f32 in the kernel.
    mm_dtype = jnp.bfloat16 if in_dtype == jnp.bfloat16 else jnp.float32

    # Fold BN (eval mode, running stats) into a per-channel affine (tiny vectors).
    scale = gamma.astype(jnp.float32) / jnp.sqrt(running_var.astype(jnp.float32) + eps)
    shift = beta.astype(jnp.float32) - running_mean.astype(jnp.float32) * scale
    scale = scale.astype(mm_dtype).reshape(cin, 1)
    shift = shift.astype(mm_dtype).reshape(cin, 1)
    wt = jnp.transpose(weight.reshape(cin, cout)).astype(mm_dtype)  # (Cout, Cin)

    # NCHW -> (N, Cin, H*W): pure reshape of a contiguous tensor, no data movement.
    x3 = x_nchw.reshape(n, cin, s)

    nb, ts = _choose_tiling(n, s, cin, cout, max_cols_cap)
    grid = (pl.cdiv(n, nb), pl.cdiv(s, ts))

    itemsize = jnp.dtype(in_dtype).itemsize
    cost = pl.CostEstimate(
        flops=2 * n * s * cin * cout,
        transcendentals=0,
        bytes_accessed=n * s * (cin + cout) * itemsize
        + (cin * cout + 2 * cin) * jnp.dtype(mm_dtype).itemsize,
    )

    out = pl.pallas_call(
        _transition_block3_kernel,
        out_shape=jax.ShapeDtypeStruct((n, cout, s), in_dtype),
        grid_spec=pltpu.PrefetchScalarGridSpec(
            num_scalar_prefetch=0,
            grid=grid,
            in_specs=[
                pl.BlockSpec((nb, cin, ts), lambda b, j: (b, 0, j)),   # activations
                pl.BlockSpec((cin, 1), lambda b, j: (0, 0)),           # BN scale
                pl.BlockSpec((cin, 1), lambda b, j: (0, 0)),           # BN shift
                pl.BlockSpec((cout, cin), lambda b, j: (0, 0)),        # W^T
            ],
            out_specs=pl.BlockSpec((nb, cout, ts), lambda b, j: (b, 0, j)),
        ),
        compiler_params=pltpu.CompilerParams(
            dimension_semantics=("parallel", "parallel"),
        ),
        cost_estimate=cost,
    )(x3, scale, shift, wt)

    # (N, Cout, H*W) -> (N, Cout, H, W): free reshape, already NCHW. No transposes.
    return out.reshape(n, cout, h, w)


def _reference(x_nchw, gamma, beta, running_mean, running_var, weight):
    eps = 1e-5
    scale = gamma / jnp.sqrt(running_var + eps)
    shift = beta - running_mean * scale
    xn = x_nchw * scale[None, :, None, None] + shift[None, :, None, None]
    xr = jnp.maximum(xn, 0.0)
    w2d = weight.reshape(weight.shape[0], weight.shape[1])
    return jnp.einsum("nihw,io->nohw", xr, w2d, precision=jax.lax.Precision.HIGHEST)


def _make_inputs(key, n, cin, cout, h, w):
    k1, k2, k3, k4, k5, k6 = jax.random.split(key, 6)
    x = jax.random.normal(k1, (n, cin, h, w), dtype=jnp.float32)
    gamma = jax.random.normal(k2, (cin,), dtype=jnp.float32) * 0.1 + 1.0
    beta = jax.random.normal(k3, (cin,), dtype=jnp.float32) * 0.1
    running_mean = jax.random.normal(k4, (cin,), dtype=jnp.float32) * 0.1
    running_var = jnp.abs(jax.random.normal(k5, (cin,), dtype=jnp.float32)) * 0.5 + 0.5
    weight = jax.random.normal(k6, (cin, cout, 1, 1), dtype=jnp.float32) * 0.1
    return x, gamma, beta, running_mean, running_var, weight


if __name__ == "__main__":
    key = jax.random.PRNGKey(0)
    k_a, k_b = jax.random.split(key)

    # Test 1: shapes consistent with scale_residue_conf's TransitionBlock3(32, 16).
    N, Cin, Cout, H, W = 2, 32, 16, 16, 16
    args = _make_inputs(k_a, N, Cin, Cout, H, W)
    out = jax.block_until_ready(transition_block3(*args))
    ref = _reference(*args)
    assert out.shape == (N, Cout, H, W), out.shape
    err = float(jnp.max(jnp.abs(out - ref)))
    assert jnp.allclose(out, ref, atol=1e-4, rtol=1e-4), err

    # Test 2: N=1 with H*W=144 (not a multiple of 128) and a tiny column cap, to
    # exercise the masked partial last spatial block and the >=2-grid-step logic.
    N2, H2, W2 = 1, 12, 12
    args2 = _make_inputs(k_b, N2, Cin, Cout, H2, W2)
    out2 = jax.block_until_ready(transition_block3(*args2, max_cols_cap=128))
    ref2 = _reference(*args2)
    assert out2.shape == (N2, Cout, H2, W2), out2.shape
    err2 = float(jnp.max(jnp.abs(out2 - ref2)))
    assert jnp.allclose(out2, ref2, atol=1e-4, rtol=1e-4), err2

    print("KERNEL_OK")
</pallas_src>

<mosaic_0001>
module attributes {stable_mosaic.version = 11 : i64} {
  func.func @_transition_block3_kernel(%arg0: i32, %arg1: i32, %arg2: memref<1x32x256xf32, #tpu.memory_space<vmem>>, %arg3: memref<32x1xf32, #tpu.memory_space<vmem>>, %arg4: memref<32x1xf32, #tpu.memory_space<vmem>>, %arg5: memref<16x32xf32, #tpu.memory_space<vmem>>, %arg6: memref<1x16x256xf32, #tpu.memory_space<vmem>>) attributes {dimension_semantics = [#tpu.dimension_semantics<parallel>, #tpu.dimension_semantics<parallel>], iteration_bounds = array<i64: 2, 1>, scalar_prefetch = 0 : i64, scratch_operands = 0 : i64, tpu.core_type = #tpu.core_type<tc>, window_params = [{transform_indices = @transform_0, window_bounds = array<i64: 1, 32, 256>}, {pipeline_mode = #tpu.pipeline_mode<synchronous>, transform_indices = @transform_1, window_bounds = array<i64: 32, 1>}, {pipeline_mode = #tpu.pipeline_mode<synchronous>, transform_indices = @transform_2, window_bounds = array<i64: 32, 1>}, {pipeline_mode = #tpu.pipeline_mode<synchronous>, transform_indices = @transform_3, window_bounds = array<i64: 16, 32>}, {transform_indices = @transform_4, window_bounds = array<i64: 1, 16, 256>}]} {
    %c0 = arith.constant 0 : index
    %c0_0 = arith.constant 0 : index
    %0 = vector.load %arg3[%c0, %c0_0] : memref<32x1xf32, #tpu.memory_space<vmem>>, vector<32x1xf32>
    %c0_1 = arith.constant 0 : index
    %c0_2 = arith.constant 0 : index
    %1 = vector.load %arg4[%c0_1, %c0_2] : memref<32x1xf32, #tpu.memory_space<vmem>>, vector<32x1xf32>
    %c0_3 = arith.constant 0 : index
    %c0_4 = arith.constant 0 : index
    %2 = vector.load %arg5[%c0_3, %c0_4] : memref<16x32xf32, #tpu.memory_space<vmem>>, vector<16x32xf32>
    %c0_5 = arith.constant 0 : index
    %c0_6 = arith.constant 0 : index
    %c0_7 = arith.constant 0 : index
    %3 = vector.load %arg2[%c0_5, %c0_6, %c0_7] : memref<1x32x256xf32, #tpu.memory_space<vmem>>, vector<1x32x256xf32>
    %4 = vector.shape_cast %3 : vector<1x32x256xf32> to vector<32x256xf32>
    %5 = vector.broadcast %0 : vector<32x1xf32> to vector<32x256xf32>
    %6 = arith.mulf %4, %5 : vector<32x256xf32>
    %7 = vector.broadcast %1 : vector<32x1xf32> to vector<32x256xf32>
    %8 = arith.addf %6, %7 : vector<32x256xf32>
    %cst = arith.constant 0.000000e+00 : f32
    %9 = vector.broadcast %cst : f32 to vector<32x256xf32>
    %10 = arith.maximumf %8, %9 : vector<32x256xf32>
    %cst_8 = arith.constant dense<0.000000e+00> : vector<16x256xf32>
    %11 = tpu.matmul %2, %10, %cst_8 {dimension_numbers = #tpu.dot_dimension_numbers<[1], [0], [0], [1], [0, 0, 1, 1], [], []>} : vector<16x32xf32>, vector<32x256xf32>, vector<16x256xf32> -> vector<16x256xf32>
    %c0_9 = arith.constant 0 : index
    %c0_10 = arith.constant 0 : index
    %c0_11 = arith.constant 0 : index
    %12 = vector.load %arg6[%c0_9, %c0_10, %c0_11] : memref<1x16x256xf32, #tpu.memory_space<vmem>>, vector<1x16x256xf32>
    %13 = vector.shape_cast %12 : vector<1x16x256xf32> to vector<16x256xf32>
    %14 = vector.shape_cast %11 : vector<16x256xf32> to vector<1x16x256xf32>
    tpu.vector_store %arg6[%c0_9, %c0_10, %c0_11], %14 {strides = array<i32>} : memref<1x16x256xf32, #tpu.memory_space<vmem>>, vector<1x16x256xf32>,
    return
  }
  func.func @transform_0(%arg0: i32, %arg1: i32) -> (i32, i32, i32) {
    %c0_i32 = arith.constant 0 : i32
    %c0_i32_0 = arith.constant 0 : i32
    return %arg0, %c0_i32, %arg1 : i32, i32, i32
  }
  func.func @transform_1(%arg0: i32, %arg1: i32) -> (i32, i32) {
    %c0_i32 = arith.constant 0 : i32
    %c0_i32_0 = arith.constant 0 : i32
    %c0_i32_1 = arith.constant 0 : i32
    return %c0_i32, %c0_i32_0 : i32, i32
  }
  func.func @transform_2(%arg0: i32, %arg1: i32) -> (i32, i32) {
    %c0_i32 = arith.constant 0 : i32
    %c0_i32_0 = arith.constant 0 : i32
    %c0_i32_1 = arith.constant 0 : i32
    return %c0_i32, %c0_i32_0 : i32, i32
  }
  func.func @transform_3(%arg0: i32, %arg1: i32) -> (i32, i32) {
    %c0_i32 = arith.constant 0 : i32
    %c0_i32_0 = arith.constant 0 : i32
    %c0_i32_1 = arith.constant 0 : i32
    return %c0_i32, %c0_i32_0 : i32, i32
  }
  func.func @transform_4(%arg0: i32, %arg1: i32) -> (i32, i32, i32) {
    %c0_i32 = arith.constant 0 : i32
    %c0_i32_0 = arith.constant 0 : i32
    return %arg0, %c0_i32, %arg1 : i32, i32, i32
  }
}

</mosaic_0001>

<bundles_post_ra>
// kernel: transition_block3.1
= control target key start
LH: loop header
LB: loop body
LE: loop exit
PB: predicated region body
PF: predicated region fallthrough
CT: control target
= control target key end

     0   :  { %s600_s15 = smov 0   ;;  %s602_s16 = smov 0   ;;  %s671_s0 = inlined_call_operand.vmem [shape: f32[2,32,256], index: 0, kind: input, shape index: {}]   ;;  %s672_s1 = inlined_call_operand.vmem [shape: f32[32,1], index: 1, kind: input, shape index: {}]   ;;  %s673_s2 = inlined_call_operand.vmem [shape: f32[32,1], index: 2, kind: input, shape index: {}]   ;;  %s674_s3 = inlined_call_operand.vmem [shape: f32[16,32], index: 3, kind: input, shape index: {}]   ;;  %s675_s4 = inlined_call_operand.vmem [shape: f32[2,16,256], index: 4, kind: output, shape index: {}]  }
   0x1   :  { %s604_s17 = smov 0  }
   0x2 LB: > { %s26_s18 = sadd.s32 1, %s567_s16  ;;  %p498_p0 = scmp.ge.s32.totalorder %s571_s17, 1  ;;  %s571_s17 = sphi %s604_s17, %s14_s17   ;;  %s567_s16 = sphi %s602_s16, %s677_s16   ;;  %s563_s15 = sphi %s600_s15, %s676_s15  }
   0x3   : > { %p28_p1 = scmp.ge.s32.totalorder %s26_s18, 2  ;;  %p183_p2 = scmp.lt.s32.totalorder %s571_s17, 3 }
   0x5   : > { %s679_s18 = smov (%p28_p1, %s26_s18), 0  ;;  %p184_p3 = pnand %p498_p0, %p183_p2 }
   0x6   : > { %v241_v0 = vld [vmem:[%s673_s2] sm:$0xff] (!%p184_p3)  ;;  %v573_v2 = vmov (!%p184_p3), 0   ;;  %v242_v3 = vld [vmem:[%s673_s2 + $0x8] sm:$0xff] (!%p184_p3)  ;;  %v240_v5 = vld [vmem:[%s672_s1 + $0x18] sm:$0xff] (!%p184_p3)  ;;  %v574_v9 = vmov (!%p184_p3), 0.0   ;;  %p218_p4 = scmp.lt.s32.totalorder (!%p184_p3), %s563_s15, 1 }
   0x7   : > { %187 = sbr.rel (%p184_p3) target bundleno = 372 (0x174), region = 36  ;;  %v237_v1 = vld [vmem:[%s672_s1] sm:$0xff] (!%p184_p3)  ;;  %548 = vset.pattern.permute.xlu1 (!%p184_p3), %v573_v2  ;;  %547 = vset.pattern.permute.xlu0 (!%p184_p3), %v573_v2  ;;  %v238_v4 = vld [vmem:[%s672_s1 + $0x8] sm:$0xff] (!%p184_p3)  ;;  %v239_v6 = vld [vmem:[%s672_s1 + $0x10] sm:$0xff] (!%p184_p3)  ;;  %vm319_vm0 = vcmask (!%p184_p3), 261120  }
   0x8   : > { %285 = vperm.xlu1 (!%p184_p3), %548, %v241_v0   ;;  %257 = vperm.xlu0 (!%p184_p3), %547, %v237_v1   ;;  %v244_v7 = vld [vmem:[%s673_s2 + $0x18] sm:$0xff] (!%p184_p3)  ;;  %v243_v8 = vld [vmem:[%s673_s2 + $0x10] sm:$0xff] (!%p184_p3)  ;;  %v245_v54 = vld [vmem:[%s674_s3] sm:$0xff] (!%p184_p3) }
   0x9   : > { %390 = vmatprep.mubr.f32.mxu0 (!%p184_p3), %v574_v9  ;;  %396 = vmatprep.mubr.f32.mxu1 (!%p184_p3), %v574_v9  ;;  %v246_v55 = vld [vmem:[%s674_s3 + $0x8] sm:$0xff] (!%p184_p3) }
   0xc   : > { %290 = vperm.xlu1 (!%p184_p3), %548, %v242_v3   ;;  %262 = vperm.xlu0 (!%p184_p3), %547, %v238_v4  }
   0xe   : > { %s681_s15 = smov (!%p218_p4, %s563_s15), 1 }
   0xf   : > { %s507_s9 = sshll.u32 %s681_s15, 6  ;;  %s508_s21 = sshll.u32 %s681_s15, 5 }
  0x10   : > { %272 = vperm.xlu1 %548, %v240_v5   ;;  %267 = vperm.xlu0 %547, %v239_v6   ;;  %s225_s12 = scalar_lea.vmem %s671_s0, %s507_s9  ;;  %s235_s24 = scalar_lea.vmem %s675_s4, %s508_s21 }
  0x11   : > { %v247_v10 = vld [vmem:[%s225_s12] sm:$0xff]  ;;  %v248_v11 = vld [vmem:[%s225_s12 + $0x8] sm:$0xff]  ;;  %v249_v16 = vld [vmem:[%s225_s12 + $0x10] sm:$0xff] }
  0x12   : > { %v250_v17 = vld [vmem:[%s225_s12 + $0x18] sm:$0xff]  ;;  %v253_v26 = vld [vmem:[%s225_s12 + $0x30] sm:$0xff]  ;;  %v251_v30 = vld [vmem:[%s225_s12 + $0x20] sm:$0xff] }
  0x13   : > { %v254_v28 = vld [vmem:[%s225_s12 + $0x38] sm:$0xff]  ;;  %v252_v31 = vld [vmem:[%s225_s12 + $0x28] sm:$0xff] }
  0x14   : > { %300 = vperm.xlu1 %548, %v244_v7   ;;  %295 = vperm.xlu0 %547, %v243_v8  }
  0x87   : > { %v286_v12 = vpop.permute.xlu1 %285  ;;  %v258_v13 = vpop.permute.xlu0 %257 }
  0x88   : > { %v275_v14 = vmul.f32 %v258_v13, %v247_v10  ;;  %v276_v15 = vmul.f32 %v258_v13, %v248_v11 }
  0x8a   : > { %v303_v22 = vadd.f32 %v286_v12, %v275_v14  ;;  %v304_v23 = vadd.f32 %v286_v12, %v276_v15 }
  0x8b   : > { %v291_v18 = vpop.permute.xlu1 %290  ;;  %v263_v19 = vpop.permute.xlu0 %262 }
  0x8c   : > { %v277_v20 = vmul.f32 %v263_v19, %v249_v16  ;;  %v278_v21 = vmul.f32 %v263_v19, %v250_v17  ;;  %v312_v32 = vmax.f32 %v304_v23, 0.0  ;;  %v311_v34 = vmax.f32 %v303_v22, 0.0 }
  0x8e   : > { %v305_v24 = vadd.f32 %v291_v18, %v277_v20  ;;  %v306_v25 = vadd.f32 %v291_v18, %v278_v21 }
  0x8f   : > { %v273_v27 = vpop.permute.xlu1 %272  ;;  %v268_v29 = vpop.permute.xlu0 %267 }
  0x90   : > { %v314_v33 = vmax.f32 %v306_v25, 0.0  ;;  %v313_v35 = vmax.f32 %v305_v24, 0.0  ;;  %v281_v36 = vmul.f32 %v273_v27, %v253_v26  ;;  %v282_v37 = vmul.f32 %v273_v27, %v254_v28 }
  0x91   : > { %v279_v38 = vmul.f32 %v268_v29, %v251_v30  ;;  %v280_v39 = vmul.f32 %v268_v29, %v252_v31 }
  0x92   : > { %v509_v42 = vpack.c.bf16 %v314_v33, %v312_v32  ;;  %v511_v43 = vpack.c.bf16 %v313_v35, %v311_v34 }
  0x93   : > { %v301_v40 = vpop.permute.xlu1 %300  ;;  %v296_v41 = vpop.permute.xlu0 %295 }
  0x94   : > { %v309_v44 = vadd.f32 %v301_v40, %v281_v36  ;;  %v310_v45 = vadd.f32 %v301_v40, %v282_v37  ;;  %v307_v46 = vadd.f32 %v296_v41, %v279_v38  ;;  %v308_v47 = vadd.f32 %v296_v41, %v280_v39  ;;  %510 = vmatprep.subr.bf16.mxu0 %v509_v42 }
  0x95   : > { %517 = vmatprep.subr.bf16.mxu1 %v509_v42  ;;  %512 = vmatpush1.bf16.msra.mxu0 %v511_v43 }
  0x96   : > { %v317_v48 = vmax.f32 %v309_v44, 0.0  ;;  %v318_v49 = vmax.f32 %v310_v45, 0.0  ;;  %v315_v50 = vmax.f32 %v307_v46, 0.0  ;;  %v316_v51 = vmax.f32 %v308_v47, 0.0  ;;  %519 = vmatpush1.bf16.msra.mxu1 %v511_v43 }
  0x98   : > { %v513_v52 = vpack.c.bf16 %v318_v49, %v316_v51  ;;  %v515_v53 = vpack.c.bf16 %v317_v48, %v315_v50 }
  0x9a   : > { %514 = vmatprep.subr.bf16.mxu0 %v513_v52  ;;  %518 = vmatprep.subr.bf16.mxu1 %v513_v52 }
  0x9b   : > { %516 = vmatpush1.bf16.msra.mxu0 %v515_v53  ;;  %520 = vmatpush1.bf16.msra.mxu1 %v515_v53 }
  0x9e   : > { %503 = vmatmul.mubr.msk.f32.vlgmr.msra.gmra.mrb[0].mxu0 %vm319_vm0, %v245_v54  ;;  %504 = vmatmul.mubr.msk.f32.vlgmr.msra.gmra.mrb[0].mxu1 %vm319_vm0, %v246_v55 }
 0x171   : > { %v392_v56 = vpop.f32.mrb[0].mxu0  ;;  %v398_v57 = vpop.f32.mrb[0].mxu1 }
 0x172   : > { %403 = vst [vmem:[%s235_s24] sm:$0xff] %v392_v56  ;;  %405 = vst [vmem:[%s235_s24 + $0x10] sm:$0xff] %v398_v57  ;;  %v394_v58 = vpop.f32.mrb[1].mxu0  ;;  %v400_v59 = vpop.f32.mrb[1].mxu1 }
 0x173   : > { %404 = vst [vmem:[%s235_s24 + $0x8] sm:$0xff] %v394_v58  ;;  %406 = vst [vmem:[%s235_s24 + $0x18] sm:$0xff] %v400_v59 }
 0x174 PF: > { %s14_s17 = sadd.s32 1, %s571_s17   ;;  %s676_s15 = smov %s567_s16 }
 0x175   : > { %p11_p5 = scmp.ge.s32.totalorder %s14_s17, 4   ;;  %s677_s16 = smov %s679_s18 }
 0x177   :  { %13 = sbr.rel (!%p11_p5) target bundleno = 2 (0x2), region = 66 }

</bundles_post_ra>
